<compile_context>
chip_gen: v7x
topology: tpu7x:2x2x1
jax: 0.10.0
libtpu: 0.0.40
codegen_flags: <defaults>
</compile_context>

<pallas_src>
import functools
import math

import jax
import jax.numpy as jnp
from jax import lax
from jax.experimental import pallas as pl
from jax.experimental.pallas import tpu as pltpu


def _round_up(x, m):
    return ((x + m - 1) // m) * m


def _vmem_limit_bytes(estimate_bytes):
    # Derive the scoped-VMEM cap from the actual block/scratch footprint (4x
    # headroom for Mosaic internals) instead of hardcoding; stays under the
    # v7x 64 MiB/TC physical limit.
    return int(min(48 * 1024 * 1024, max(16 * 1024 * 1024, 4 * estimate_bytes)))


# ----------------------------------------------------------------------------
# Fused tiled linear kernel(s): y_i = x_i @ w_i + b_i for i in range(n)
# (w_i passed pre-transposed as (K, O) and pre-padded to tile multiples)
# ----------------------------------------------------------------------------
def _make_multi_linear_kernel(n):
    def kernel(*refs):
        x_refs = refs[0:n]
        w_refs = refs[n:2 * n]
        b_refs = refs[2 * n:3 * n]
        o_refs = refs[3 * n:4 * n]
        acc_refs = refs[4 * n:5 * n]
        k_step = pl.program_id(2)

        @pl.when(k_step == 0)
        def _init():
            for acc in acc_refs:
                acc[...] = jnp.zeros_like(acc)

        for x, w, acc in zip(x_refs, w_refs, acc_refs):
            acc[...] += jnp.dot(x[...], w[...], preferred_element_type=jnp.float32)

        @pl.when(k_step == pl.num_programs(2) - 1)
        def _finalize():
            for o, acc, b in zip(o_refs, acc_refs, b_refs):
                o[...] = (acc[...] + b[...]).astype(o.dtype)

    return kernel


def pallas_multi_linear(xs, w_ts, bs, *, out_dim, out_dtype, tm=256, tn=256, tk=512):
    """Fused y_i = x_i @ w_i + b_i sharing one grid / launch.

    xs:   list of (M, K) activations (all the same shape).
    w_ts: list of (Kp, Op) weights, pre-transposed and pre-padded to tile multiples.
    bs:   list of (1, Op) float32 biases, pre-padded.
    Returns list of (M, out_dim) arrays of dtype out_dtype.
    """
    n = len(xs)
    M, K = xs[0].shape
    Kp, Op = w_ts[0].shape
    dtype = w_ts[0].dtype

    tm = M if M <= tm else tm
    tk = Kp if Kp <= tk else tk
    tn = Op if Op <= tn else tn
    assert Kp % tk == 0 and Op % tn == 0, "weights must be pre-padded to tile multiples"
    Mp = _round_up(M, tm)

    xs = [x.astype(dtype) for x in xs]
    if (Mp, Kp) != (M, K):                      # usually a no-op for typical dims
        xs = [jnp.pad(x, ((0, Mp - M), (0, Kp - K))) for x in xs]

    grid = (Mp // tm, Op // tn, Kp // tk)
    in_itemsize = jnp.dtype(dtype).itemsize
    out_itemsize = jnp.dtype(out_dtype).itemsize
    vmem_est = n * (2 * (tm * tk + tk * tn + tn) * in_itemsize   # dbl-buffered ins
                    + 2 * tm * tn * out_itemsize                 # dbl-buffered out
                    + tm * tn * 4)                               # f32 accumulator

    outs = pl.pallas_call(
        _make_multi_linear_kernel(n),
        out_shape=tuple(jax.ShapeDtypeStruct((Mp, Op), out_dtype) for _ in range(n)),
        grid_spec=pltpu.PrefetchScalarGridSpec(
            num_scalar_prefetch=0,
            grid=grid,
            in_specs=(
                [pl.BlockSpec((tm, tk), lambda i, j, k: (i, k))] * n
                + [pl.BlockSpec((tk, tn), lambda i, j, k: (k, j))] * n
                + [pl.BlockSpec((1, tn), lambda i, j, k: (0, j))] * n),
            out_specs=[pl.BlockSpec((tm, tn), lambda i, j, k: (i, j))] * n,
            scratch_shapes=[pltpu.VMEM((tm, tn), jnp.float32) for _ in range(n)],
        ),
        compiler_params=pltpu.CompilerParams(
            dimension_semantics=("parallel", "parallel", "arbitrary"),
            vmem_limit_bytes=_vmem_limit_bytes(vmem_est),
        ),
        cost_estimate=pl.CostEstimate(
            flops=2 * n * Mp * Kp * Op,
            transcendentals=0,
            bytes_accessed=n * ((Mp * Kp + Kp * Op) * in_itemsize
                                + Mp * Op * out_itemsize)),
    )(*xs, *w_ts, *bs)

    if (Mp, Op) != (M, out_dim):
        outs = [o[:M, :out_dim] for o in outs]
    return list(outs)


# ----------------------------------------------------------------------------
# Flash-style causal multi-head attention.
# Blocks are lane-dense (tq, H*D); heads are sliced inside the kernel.
# ----------------------------------------------------------------------------
def _mha_flash_kernel(q_ref, k_ref, v_ref, o_ref, m_ref, l_ref, acc_ref, *,
                      nheads, e_head, tq, tkv, kv_len, kv_len_padded, scale,
                      recip_approx):
    qi = pl.program_id(1)
    ki = pl.program_id(2)

    @pl.when(ki == 0)
    def _init():
        m_ref[...] = jnp.full_like(m_ref, -jnp.inf)
        l_ref[...] = jnp.zeros_like(l_ref)
        acc_ref[...] = jnp.zeros_like(acc_ref)

    # Tiles entirely above the causal diagonal: nothing to compute (their K/V
    # DMA is also elided by the clamped index_map).
    compute = ki * tkv <= qi * tq + (tq - 1)
    # Only boundary tiles (straddling the diagonal or the padded KV tail) need
    # the O(tq*tkv) mask compares/selects.
    needs_mask = ki * tkv + (tkv - 1) > qi * tq
    if kv_len < kv_len_padded:                              # static
        needs_mask = jnp.logical_or(needs_mask, (ki + 1) * tkv > kv_len)

    def _tile_update(apply_mask):
        q = q_ref[0]                                        # (tq,  H*D) lane-dense
        k = k_ref[0]                                        # (tkv, H*D)
        v = v_ref[0]
        if scale != 1.0:   # normally folded into the q projection weights -> no-op
            q = q * jnp.asarray(scale, dtype=q.dtype)

        if apply_mask:
            row = qi * tq + lax.broadcasted_iota(jnp.int32, (tq, tkv), 0)
            col = ki * tkv + lax.broadcasted_iota(jnp.int32, (tq, tkv), 1)
            valid = col <= row
            if kv_len < kv_len_padded:
                valid = jnp.logical_and(valid, col < kv_len)
            neg = jnp.float32(-1e30)

        nt_dims = (((1,), (1,)), ((), ()))                  # q @ k.T w/o transpose
        m_prev = m_ref[...]                                 # (tq, H), one load

        m_cols, a_cols, sum_cols, pv_cols = [], [], [], []
        # NOTE: for e_head < 128 the QK/PV contractions underfill the MXU and the
        # per-head lane slices are unaligned; the kernel is then VPU/EUP-bound,
        # which the lane-dense state updates below are optimized for.
        for h in range(nheads):                             # static unroll over heads
            sl = slice(h * e_head, (h + 1) * e_head)
            s = lax.dot_general(q[:, sl], k[:, sl], nt_dims,
                                preferred_element_type=jnp.float32)   # (tq, tkv)
            if apply_mask:
                s = jnp.where(valid, s, neg)
            m_prev_h = m_prev[:, h:h + 1]                                # (tq, 1)
            m_new_h = jnp.maximum(m_prev_h, jnp.max(s, axis=-1, keepdims=True))
            alpha_h = jnp.exp(m_prev_h - m_new_h)
            p = jnp.exp(s - m_new_h)                                     # (tq, tkv)
            if apply_mask:
                # Rows with zero valid columns would otherwise get exp(0) = 1.
                p = jnp.where(valid, p, 0.0)
            pv = jnp.dot(p.astype(v.dtype), v[:, sl],
                         preferred_element_type=jnp.float32)             # (tq, e_head)
            m_cols.append(m_new_h)
            a_cols.append(alpha_h)
            sum_cols.append(jnp.sum(p, axis=-1, keepdims=True))
            pv_cols.append(pv)

        # Lane-dense state update: single (tq, H) stores for m/l and ONE
        # (tq, H*D) rescale+accumulate (no per-head masked stores).
        alpha = jnp.concatenate(a_cols, axis=-1)                         # (tq, H)
        alpha_rep = jnp.concatenate(
            [jnp.broadcast_to(a, (tq, e_head)) for a in a_cols], axis=-1)  # (tq, H*D)
        m_ref[...] = jnp.concatenate(m_cols, axis=-1)
        l_ref[...] = alpha * l_ref[...] + jnp.concatenate(sum_cols, axis=-1)
        acc_ref[...] = alpha_rep * acc_ref[...] + jnp.concatenate(pv_cols, axis=-1)

    @pl.when(jnp.logical_and(compute, needs_mask))
    def _boundary_tile():
        _tile_update(True)

    @pl.when(jnp.logical_and(compute, jnp.logical_not(needs_mask)))
    def _interior_tile():
        _tile_update(False)

    @pl.when(ki == pl.num_programs(2) - 1)
    def _finalize():
        # Deferred normalization: one lane-dense multiply of the (tq, H*D)
        # accumulator by the per-head reciprocals broadcast across head lanes.
        inv = pl.reciprocal(l_ref[...], approx=recip_approx)             # (tq, H)
        inv_rep = jnp.concatenate(
            [jnp.broadcast_to(inv[:, h:h + 1], (tq, e_head)) for h in range(nheads)],
            axis=-1)                                                     # (tq, H*D)
        o_ref[0] = (acc_ref[...] * inv_rep).astype(o_ref.dtype)


def pallas_causal_mha(q, k, v, *, nheads, scale=None, tq=256, tkv=256,
                      recip_approx=True):
    """q: (N, L_t, E_total); k, v: (N, L_s, E_total). Returns (N, L_t, E_total)."""
    N, L_t, E_total = q.shape
    _, L_s, _ = k.shape
    assert E_total % nheads == 0
    e_head = E_total // nheads
    if scale is None:
        scale = 1.0 / math.sqrt(e_head)

    # 256-wide tiles suit v6e/v7x (2x256 MXU); pass tq=tkv=128 on v5e.
    tq = L_t if L_t <= tq else tq
    tkv = L_s if L_s <= tkv else tkv
    Lt_p, Ls_p = _round_up(L_t, tq), _round_up(L_s, tkv)
    if Lt_p != L_t:
        q = jnp.pad(q, ((0, 0), (0, Lt_p - L_t), (0, 0)))
    if Ls_p != L_s:
        k = jnp.pad(k, ((0, 0), (0, Ls_p - L_s), (0, 0)))
        v = jnp.pad(v, ((0, 0), (0, Ls_p - L_s), (0, 0)))

    grid = (N, Lt_p // tq, Ls_p // tkv)
    kernel = functools.partial(
        _mha_flash_kernel, nheads=nheads, e_head=e_head, tq=tq, tkv=tkv,
        kv_len=L_s, kv_len_padded=Ls_p, scale=scale, recip_approx=recip_approx)

    def q_map(n, i, j):
        return (n, i, 0)

    # K/V tiles strictly above the causal diagonal are never computed; clamp
    # their block index to the diagonal so skipped steps alias the resident
    # block and Pallas elides the redundant DMA (~halves K/V HBM traffic).
    def kv_map(n, i, j):
        return (n, jnp.minimum(j, (i * tq + (tq - 1)) // tkv), 0)

    itemsize = jnp.dtype(q.dtype).itemsize
    vmem_est = (2 * (2 * tq + 2 * tkv) * E_total * itemsize        # dbl-buffered q,k,v,o
                + (tq * E_total + 2 * tq * nheads) * 4)            # acc, m, l scratch

    out = pl.pallas_call(
        kernel,
        out_shape=jax.ShapeDtypeStruct((N, Lt_p, E_total), q.dtype),
        grid_spec=pltpu.PrefetchScalarGridSpec(
            num_scalar_prefetch=0,
            grid=grid,
            in_specs=[
                pl.BlockSpec((1, tq, E_total), q_map),
                pl.BlockSpec((1, tkv, E_total), kv_map),
                pl.BlockSpec((1, tkv, E_total), kv_map),
            ],
            out_specs=pl.BlockSpec((1, tq, E_total), q_map),
            scratch_shapes=[
                pltpu.VMEM((tq, nheads), jnp.float32),       # running max m
                pltpu.VMEM((tq, nheads), jnp.float32),       # running sum l
                pltpu.VMEM((tq, E_total), jnp.float32),      # output accumulator
            ],
        ),
        compiler_params=pltpu.CompilerParams(
            dimension_semantics=("parallel", "parallel", "arbitrary"),
            vmem_limit_bytes=_vmem_limit_bytes(vmem_est),
        ),
        cost_estimate=pl.CostEstimate(
            flops=2 * N * L_t * L_s * E_total,               # qk + pv, causal-halved
            transcendentals=N * nheads * L_t * L_s // 2,
            bytes_accessed=N * (2 * L_t + L_s) * E_total * itemsize),
    )(q, k, v)

    if Lt_p != L_t:
        out = out[:, :L_t, :]
    return out


# ----------------------------------------------------------------------------
# Module wrapper
# ----------------------------------------------------------------------------
class MultiHeadAttentionPallas:
    """Pallas-TPU port of the PyTorch MultiHeadAttention module (forward only)."""

    def __init__(self, E_q, E_k, E_v, E_total, nheads, dropout_p=0.0, *,
                 key=None, matmul_dtype=jnp.bfloat16,
                 lin_tm=256, lin_tn=256, lin_tk=512, attn_tq=256, attn_tkv=256):
        assert E_total % nheads == 0, "Embedding dim is not divisible by nheads"
        self.nheads = nheads
        # TODO(synk): dropout_p > 0 not implemented; the module's default 0.0 is a no-op.
        self.dropout_p = dropout_p
        self.E_head = E_total // nheads
        self.E_q = E_q
        self.E_total = E_total
        self.matmul_dtype = matmul_dtype
        self._lin_tm, self._lin_tn, self._lin_tk = lin_tm, lin_tn, lin_tk
        # NOTE: keep attn tiles at 128 on v5e (4x128 MXU); 256 suits v6e/v7x.
        self._attn_tq, self._attn_tkv = attn_tq, attn_tkv
        # Exact reciprocal on the f32 numerical-check path, EUP approx otherwise.
        self._recip_approx = jnp.dtype(matmul_dtype) != jnp.dtype(jnp.float32)

        if key is None:
            key = jax.random.PRNGKey(0)
        ks = jax.random.split(key, 8)
        init = lambda k, shape: (0.02 * jax.random.normal(k, shape)).astype(jnp.float32)

        # f32 master copies (PyTorch nn.Linear layout: (out_features, in_features)).
        self.q_w = init(ks[0], (E_total, E_q)); self.q_b = init(ks[1], (E_total,))
        self.k_w = init(ks[2], (E_total, E_k)); self.k_b = init(ks[3], (E_total,))
        self.v_w = init(ks[4], (E_total, E_v)); self.v_b = init(ks[5], (E_total,))
        self.o_w = init(ks[6], (E_q, E_total)); self.o_b = init(ks[7], (E_q,))

        # Pre-transposed (K, O), pre-padded to tile multiples, cast to the MXU
        # dtype once at init (no per-forward pads/transposes/casts).  The softmax
        # 1/sqrt(E_head) is folded into the q projection (free at runtime).
        scale = 1.0 / math.sqrt(self.E_head)
        self.q_wt, self.q_b2 = self._prep(self.q_w, self.q_b, scale)
        self.k_wt, self.k_b2 = self._prep(self.k_w, self.k_b)
        self.v_wt, self.v_b2 = self._prep(self.v_w, self.v_b)
        self.o_wt, self.o_b2 = self._prep(self.o_w, self.o_b)

    def _prep(self, w, b, scale=1.0):
        O, K = w.shape
        tk = K if K <= self._lin_tk else self._lin_tk
        tn = O if O <= self._lin_tn else self._lin_tn
        Kp, Op = _round_up(K, tk), _round_up(O, tn)
        wt = (w.T * scale).astype(self.matmul_dtype)
        b2 = (b * scale).astype(jnp.float32).reshape(1, O)
        if (Kp, Op) != (K, O):
            wt = jnp.pad(wt, ((0, Kp - K), (0, Op - O)))
            b2 = jnp.pad(b2, ((0, 0), (0, Op - O)))
        return wt, b2

    def __call__(self, query, key, value):
        # query: (N, L_t, E_q), key: (N, L_s, E_k), value: (N, L_s, E_v)
        N, L_t, _ = query.shape
        _, L_s, _ = key.shape
        md = self.matmul_dtype
        E_total = self.E_total

        xq = query.reshape(N * L_t, -1)
        xk = key.reshape(N * L_s, -1)
        xv = value.reshape(N * L_s, -1)

        # 1. Input projections.  When q/k/v activations and weights share shapes
        #    (the common self-attention-style case), all three matmuls run in a
        #    single pallas_call (one launch, one pipeline fill/drain).
        lin_kwargs = dict(out_dim=E_total, out_dtype=md,
                          tm=self._lin_tm, tn=self._lin_tn, tk=self._lin_tk)
        if (xq.shape == xk.shape == xv.shape
                and self.q_wt.shape == self.k_wt.shape == self.v_wt.shape):
            q, k, v = pallas_multi_linear(
                [xq, xk, xv], [self.q_wt, self.k_wt, self.v_wt],
                [self.q_b2, self.k_b2, self.v_b2], **lin_kwargs)
        else:
            (q,) = pallas_multi_linear([xq], [self.q_wt], [self.q_b2], **lin_kwargs)
            (k,) = pallas_multi_linear([xk], [self.k_wt], [self.k_b2], **lin_kwargs)
            (v,) = pallas_multi_linear([xv], [self.v_wt], [self.v_b2], **lin_kwargs)

        # 2+3. Flash-style causal SDPA; heads split inside the kernel (no head
        #      transpose round-trip through HBM).  scale=1.0 because the
        #      1/sqrt(E_head) factor is folded into the q projection weights.
        attn = pallas_causal_mha(
            q.reshape(N, L_t, E_total), k.reshape(N, L_s, E_total),
            v.reshape(N, L_s, E_total), nheads=self.nheads, scale=1.0,
            tq=self._attn_tq, tkv=self._attn_tkv,
            recip_approx=self._recip_approx)                 # (N, L_t, E_total)

        # 4. Output projection back to E_q, f32 output.
        (out,) = pallas_multi_linear(
            [attn.reshape(N * L_t, E_total)], [self.o_wt], [self.o_b2],
            out_dim=self.E_q, out_dtype=jnp.float32,
            tm=self._lin_tm, tn=self._lin_tn, tk=self._lin_tk)
        return out.reshape(N, L_t, self.E_q)


# ----------------------------------------------------------------------------
# Pure-JAX f32 reference
# ----------------------------------------------------------------------------
def reference_forward(mha, query, key, value):
    N, L_t, _ = query.shape
    _, L_s, _ = key.shape
    H, D = mha.nheads, mha.E_head
    q = query @ mha.q_w.T + mha.q_b
    k = key @ mha.k_w.T + mha.k_b
    v = value @ mha.v_w.T + mha.v_b
    q = q.reshape(N, L_t, H, D).transpose(0, 2, 1, 3)
    k = k.reshape(N, L_s, H, D).transpose(0, 2, 1, 3)
    v = v.reshape(N, L_s, H, D).transpose(0, 2, 1, 3)
    s = jnp.einsum("nhqd,nhkd->nhqk", q, k) / math.sqrt(D)
    mask = jnp.tril(jnp.ones((L_t, L_s), dtype=bool))
    s = jnp.where(mask, s, -1e30)
    p = jax.nn.softmax(s, axis=-1)
    o = jnp.einsum("nhqk,nhkd->nhqd", p, v)
    o = o.transpose(0, 2, 1, 3).reshape(N, L_t, H * D)
    return o @ mha.o_w.T + mha.o_b


# ----------------------------------------------------------------------------
if __name__ == "__main__":
    N = 2          # batch
    L = 8          # seq len (L_t == L_s)
    E_q = 32       # query embed dim (== E_out)
    E_k = 32
    E_v = 32
    E_total = 64   # -> E_head = 8
    nheads = 8
    dropout_p = 0.0

    root = jax.random.PRNGKey(0)
    k_param, k_q, k_k, k_v = jax.random.split(root, 4)

    query = jax.random.normal(k_q, (N, L, E_q), dtype=jnp.float32)
    key = jax.random.normal(k_k, (N, L, E_k), dtype=jnp.float32)
    value = jax.random.normal(k_v, (N, L, E_v), dtype=jnp.float32)

    # --- f32 MXU operands: tight numerical check against the reference -------
    mha_f32 = MultiHeadAttentionPallas(E_q, E_k, E_v, E_total, nheads, dropout_p,
                                       key=k_param, matmul_dtype=jnp.float32)
    out_f32 = jax.block_until_ready(mha_f32(query, key, value))
    ref = reference_forward(mha_f32, query, key, value)
    assert out_f32.shape == (N, L, E_q), out_f32.shape
    assert jnp.allclose(out_f32, ref, atol=2e-3, rtol=2e-3), \
        float(jnp.max(jnp.abs(out_f32 - ref)))

    # --- bf16 MXU operands (recommended on v6e/v7x), f32 accumulation --------
    mha_bf16 = MultiHeadAttentionPallas(E_q, E_k, E_v, E_total, nheads, dropout_p,
                                        key=k_param, matmul_dtype=jnp.bfloat16)
    out_bf16 = jax.block_until_ready(mha_bf16(query, key, value))
    assert out_bf16.shape == (N, L, E_q), out_bf16.shape
    assert jnp.allclose(out_bf16, ref, atol=1e-2, rtol=1e-2), \
        float(jnp.max(jnp.abs(out_bf16 - ref)))

    print("KERNEL_OK")
</pallas_src>

<mosaic_0001>
module attributes {stable_mosaic.version = 11 : i64} {
  func.func @kernel(%arg0: i32, %arg1: i32, %arg2: i32, %arg3: memref<16x32xf32, #tpu.memory_space<vmem>>, %arg4: memref<16x32xf32, #tpu.memory_space<vmem>>, %arg5: memref<16x32xf32, #tpu.memory_space<vmem>>, %arg6: memref<32x64xf32, #tpu.memory_space<vmem>>, %arg7: memref<32x64xf32, #tpu.memory_space<vmem>>, %arg8: memref<32x64xf32, #tpu.memory_space<vmem>>, %arg9: memref<1x64xf32, #tpu.memory_space<vmem>>, %arg10: memref<1x64xf32, #tpu.memory_space<vmem>>, %arg11: memref<1x64xf32, #tpu.memory_space<vmem>>, %arg12: memref<16x64xf32, #tpu.memory_space<vmem>>, %arg13: memref<16x64xf32, #tpu.memory_space<vmem>>, %arg14: memref<16x64xf32, #tpu.memory_space<vmem>>, %arg15: memref<16x64xf32, #tpu.memory_space<vmem>>, %arg16: memref<16x64xf32, #tpu.memory_space<vmem>>, %arg17: memref<16x64xf32, #tpu.memory_space<vmem>>) attributes {dimension_semantics = [#tpu.dimension_semantics<parallel>, #tpu.dimension_semantics<parallel>, #tpu.dimension_semantics<arbitrary>], iteration_bounds = array<i64: 1, 1, 1>, scalar_prefetch = 0 : i64, scratch_operands = 3 : i64, tpu.core_type = #tpu.core_type<tc>, window_params = [{transform_indices = @transform_0, window_bounds = array<i64: 16, 32>}, {transform_indices = @transform_1, window_bounds = array<i64: 16, 32>}, {transform_indices = @transform_2, window_bounds = array<i64: 16, 32>}, {transform_indices = @transform_3, window_bounds = array<i64: 32, 64>}, {transform_indices = @transform_4, window_bounds = array<i64: 32, 64>}, {transform_indices = @transform_5, window_bounds = array<i64: 32, 64>}, {transform_indices = @transform_6, window_bounds = array<i64: 1, 64>}, {transform_indices = @transform_7, window_bounds = array<i64: 1, 64>}, {transform_indices = @transform_8, window_bounds = array<i64: 1, 64>}, {transform_indices = @transform_9, window_bounds = array<i64: 16, 64>}, {transform_indices = @transform_10, window_bounds = array<i64: 16, 64>}, {transform_indices = @transform_11, window_bounds = array<i64: 16, 64>}]} {
    %c0_i32 = arith.constant 0 : i32
    %0 = arith.cmpi eq, %arg2, %c0_i32 : i32
    %1 = arith.extui %0 : i1 to i32
    %c0_i32_0 = arith.constant 0 : i32
    %2 = arith.cmpi ne, %1, %c0_i32_0 : i32
    scf.if %2 {
      %cst_28 = arith.constant 0.000000e+00 : f32
      %24 = vector.broadcast %cst_28 : f32 to vector<16x64xf32>
      %c0_29 = arith.constant 0 : index
      %c0_30 = arith.constant 0 : index
      %25 = vector.load %arg15[%c0_29, %c0_30] : memref<16x64xf32, #tpu.memory_space<vmem>>, vector<16x64xf32>
      tpu.vector_store %arg15[%c0_29, %c0_30], %24 {strides = array<i32>} : memref<16x64xf32, #tpu.memory_space<vmem>>, vector<16x64xf32>,
      %cst_31 = arith.constant 0.000000e+00 : f32
      %26 = vector.broadcast %cst_31 : f32 to vector<16x64xf32>
      %c0_32 = arith.constant 0 : index
      %c0_33 = arith.constant 0 : index
      %27 = vector.load %arg16[%c0_32, %c0_33] : memref<16x64xf32, #tpu.memory_space<vmem>>, vector<16x64xf32>
      tpu.vector_store %arg16[%c0_32, %c0_33], %26 {strides = array<i32>} : memref<16x64xf32, #tpu.memory_space<vmem>>, vector<16x64xf32>,
      %cst_34 = arith.constant 0.000000e+00 : f32
      %28 = vector.broadcast %cst_34 : f32 to vector<16x64xf32>
      %c0_35 = arith.constant 0 : index
      %c0_36 = arith.constant 0 : index
      %29 = vector.load %arg17[%c0_35, %c0_36] : memref<16x64xf32, #tpu.memory_space<vmem>>, vector<16x64xf32>
      tpu.vector_store %arg17[%c0_35, %c0_36], %28 {strides = array<i32>} : memref<16x64xf32, #tpu.memory_space<vmem>>, vector<16x64xf32>,
    } else {
    }
    %c0 = arith.constant 0 : index
    %c0_1 = arith.constant 0 : index
    %3 = vector.load %arg15[%c0, %c0_1] : memref<16x64xf32, #tpu.memory_space<vmem>>, vector<16x64xf32>
    %c0_2 = arith.constant 0 : index
    %c0_3 = arith.constant 0 : index
    %4 = vector.load %arg3[%c0_2, %c0_3] : memref<16x32xf32, #tpu.memory_space<vmem>>, vector<16x32xf32>
    %c0_4 = arith.constant 0 : index
    %c0_5 = arith.constant 0 : index
    %5 = vector.load %arg6[%c0_4, %c0_5] : memref<32x64xf32, #tpu.memory_space<vmem>>, vector<32x64xf32>
    %cst = arith.constant dense<0.000000e+00> : vector<16x64xf32>
    %6 = tpu.matmul %4, %5, %cst {dimension_numbers = #tpu.dot_dimension_numbers<[1], [0], [0], [1], [0, 0, 1, 1], [], []>} : vector<16x32xf32>, vector<32x64xf32>, vector<16x64xf32> -> vector<16x64xf32>
    %7 = arith.addf %3, %6 : vector<16x64xf32>
    %c0_6 = arith.constant 0 : index
    %c0_7 = arith.constant 0 : index
    %8 = vector.load %arg15[%c0_6, %c0_7] : memref<16x64xf32, #tpu.memory_space<vmem>>, vector<16x64xf32>
    tpu.vector_store %arg15[%c0_6, %c0_7], %7 {strides = array<i32>} : memref<16x64xf32, #tpu.memory_space<vmem>>, vector<16x64xf32>,
    %c0_8 = arith.constant 0 : index
    %c0_9 = arith.constant 0 : index
    %9 = vector.load %arg16[%c0_8, %c0_9] : memref<16x64xf32, #tpu.memory_space<vmem>>, vector<16x64xf32>
    %c0_10 = arith.constant 0 : index
    %c0_11 = arith.constant 0 : index
    %10 = vector.load %arg4[%c0_10, %c0_11] : memref<16x32xf32, #tpu.memory_space<vmem>>, vector<16x32xf32>
    %c0_12 = arith.constant 0 : index
    %c0_13 = arith.constant 0 : index
    %11 = vector.load %arg7[%c0_12, %c0_13] : memref<32x64xf32, #tpu.memory_space<vmem>>, vector<32x64xf32>
    %cst_14 = arith.constant dense<0.000000e+00> : vector<16x64xf32>
    %12 = tpu.matmul %10, %11, %cst_14 {dimension_numbers = #tpu.dot_dimension_numbers<[1], [0], [0], [1], [0, 0, 1, 1], [], []>} : vector<16x32xf32>, vector<32x64xf32>, vector<16x64xf32> -> vector<16x64xf32>
    %13 = arith.addf %9, %12 : vector<16x64xf32>
    %c0_15 = arith.constant 0 : index
    %c0_16 = arith.constant 0 : index
    %14 = vector.load %arg16[%c0_15, %c0_16] : memref<16x64xf32, #tpu.memory_space<vmem>>, vector<16x64xf32>
    tpu.vector_store %arg16[%c0_15, %c0_16], %13 {strides = array<i32>} : memref<16x64xf32, #tpu.memory_space<vmem>>, vector<16x64xf32>,
    %c0_17 = arith.constant 0 : index
    %c0_18 = arith.constant 0 : index
    %15 = vector.load %arg17[%c0_17, %c0_18] : memref<16x64xf32, #tpu.memory_space<vmem>>, vector<16x64xf32>
    %c0_19 = arith.constant 0 : index
    %c0_20 = arith.constant 0 : index
    %16 = vector.load %arg5[%c0_19, %c0_20] : memref<16x32xf32, #tpu.memory_space<vmem>>, vector<16x32xf32>
    %c0_21 = arith.constant 0 : index
    %c0_22 = arith.constant 0 : index
    %17 = vector.load %arg8[%c0_21, %c0_22] : memref<32x64xf32, #tpu.memory_space<vmem>>, vector<32x64xf32>
    %cst_23 = arith.constant dense<0.000000e+00> : vector<16x64xf32>
    %18 = tpu.matmul %16, %17, %cst_23 {dimension_numbers = #tpu.dot_dimension_numbers<[1], [0], [0], [1], [0, 0, 1, 1], [], []>} : vector<16x32xf32>, vector<32x64xf32>, vector<16x64xf32> -> vector<16x64xf32>
    %19 = arith.addf %15, %18 : vector<16x64xf32>
    %c0_24 = arith.constant 0 : index
    %c0_25 = arith.constant 0 : index
    %20 = vector.load %arg17[%c0_24, %c0_25] : memref<16x64xf32, #tpu.memory_space<vmem>>, vector<16x64xf32>
    tpu.vector_store %arg17[%c0_24, %c0_25], %19 {strides = array<i32>} : memref<16x64xf32, #tpu.memory_space<vmem>>, vector<16x64xf32>,
    %c0_i32_26 = arith.constant 0 : i32
    %21 = arith.cmpi eq, %arg2, %c0_i32_26 : i32
    %22 = arith.extui %21 : i1 to i32
    %c0_i32_27 = arith.constant 0 : i32
    %23 = arith.cmpi ne, %22, %c0_i32_27 : i32
    scf.if %23 {
      %c0_28 = arith.constant 0 : index
      %c0_29 = arith.constant 0 : index
      %24 = vector.load %arg15[%c0_28, %c0_29] : memref<16x64xf32, #tpu.memory_space<vmem>>, vector<16x64xf32>
      %c0_30 = arith.constant 0 : index
      %c0_31 = arith.constant 0 : index
      %25 = vector.load %arg9[%c0_30, %c0_31] : memref<1x64xf32, #tpu.memory_space<vmem>>, vector<1x64xf32>
      %26 = vector.broadcast %25 : vector<1x64xf32> to vector<16x64xf32>
      %27 = arith.addf %24, %26 : vector<16x64xf32>
      %c0_32 = arith.constant 0 : index
      %c0_33 = arith.constant 0 : index
      %28 = vector.load %arg12[%c0_32, %c0_33] : memref<16x64xf32, #tpu.memory_space<vmem>>, vector<16x64xf32>
      tpu.vector_store %arg12[%c0_32, %c0_33], %27 {strides = array<i32>} : memref<16x64xf32, #tpu.memory_space<vmem>>, vector<16x64xf32>,
      %c0_34 = arith.constant 0 : index
      %c0_35 = arith.constant 0 : index
      %29 = vector.load %arg16[%c0_34, %c0_35] : memref<16x64xf32, #tpu.memory_space<vmem>>, vector<16x64xf32>
      %c0_36 = arith.constant 0 : index
      %c0_37 = arith.constant 0 : index
      %30 = vector.load %arg10[%c0_36, %c0_37] : memref<1x64xf32, #tpu.memory_space<vmem>>, vector<1x64xf32>
      %31 = vector.broadcast %30 : vector<1x64xf32> to vector<16x64xf32>
      %32 = arith.addf %29, %31 : vector<16x64xf32>
      %c0_38 = arith.constant 0 : index
      %c0_39 = arith.constant 0 : index
      %33 = vector.load %arg13[%c0_38, %c0_39] : memref<16x64xf32, #tpu.memory_space<vmem>>, vector<16x64xf32>
      tpu.vector_store %arg13[%c0_38, %c0_39], %32 {strides = array<i32>} : memref<16x64xf32, #tpu.memory_space<vmem>>, vector<16x64xf32>,
      %c0_40 = arith.constant 0 : index
      %c0_41 = arith.constant 0 : index
      %34 = vector.load %arg17[%c0_40, %c0_41] : memref<16x64xf32, #tpu.memory_space<vmem>>, vector<16x64xf32>
      %c0_42 = arith.constant 0 : index
      %c0_43 = arith.constant 0 : index
      %35 = vector.load %arg11[%c0_42, %c0_43] : memref<1x64xf32, #tpu.memory_space<vmem>>, vector<1x64xf32>
      %36 = vector.broadcast %35 : vector<1x64xf32> to vector<16x64xf32>
      %37 = arith.addf %34, %36 : vector<16x64xf32>
      %c0_44 = arith.constant 0 : index
      %c0_45 = arith.constant 0 : index
      %38 = vector.load %arg14[%c0_44, %c0_45] : memref<16x64xf32, #tpu.memory_space<vmem>>, vector<16x64xf32>
      tpu.vector_store %arg14[%c0_44, %c0_45], %37 {strides = array<i32>} : memref<16x64xf32, #tpu.memory_space<vmem>>, vector<16x64xf32>,
    } else {
    }
    return
  }
  func.func @transform_0(%arg0: i32, %arg1: i32, %arg2: i32) -> (i32, i32) {
    %c0_i32 = arith.constant 0 : i32
    return %arg0, %arg2 : i32, i32
  }
  func.func @transform_1(%arg0: i32, %arg1: i32, %arg2: i32) -> (i32, i32) {
    %c0_i32 = arith.constant 0 : i32
    return %arg0, %arg2 : i32, i32
  }
  func.func @transform_2(%arg0: i32, %arg1: i32, %arg2: i32) -> (i32, i32) {
    %c0_i32 = arith.constant 0 : i32
    return %arg0, %arg2 : i32, i32
  }
  func.func @transform_3(%arg0: i32, %arg1: i32, %arg2: i32) -> (i32, i32) {
    %c0_i32 = arith.constant 0 : i32
    return %arg2, %arg1 : i32, i32
  }
  func.func @transform_4(%arg0: i32, %arg1: i32, %arg2: i32) -> (i32, i32) {
    %c0_i32 = arith.constant 0 : i32
    return %arg2, %arg1 : i32, i32
  }
  func.func @transform_5(%arg0: i32, %arg1: i32, %arg2: i32) -> (i32, i32) {
    %c0_i32 = arith.constant 0 : i32
    return %arg2, %arg1 : i32, i32
  }
  func.func @transform_6(%arg0: i32, %arg1: i32, %arg2: i32) -> (i32, i32) {
    %c0_i32 = arith.constant 0 : i32
    %c0_i32_0 = arith.constant 0 : i32
    return %c0_i32, %arg1 : i32, i32
  }
  func.func @transform_7(%arg0: i32, %arg1: i32, %arg2: i32) -> (i32, i32) {
    %c0_i32 = arith.constant 0 : i32
    %c0_i32_0 = arith.constant 0 : i32
    return %c0_i32, %arg1 : i32, i32
  }
  func.func @transform_8(%arg0: i32, %arg1: i32, %arg2: i32) -> (i32, i32) {
    %c0_i32 = arith.constant 0 : i32
    %c0_i32_0 = arith.constant 0 : i32
    return %c0_i32, %arg1 : i32, i32
  }
  func.func @transform_9(%arg0: i32, %arg1: i32, %arg2: i32) -> (i32, i32) {
    %c0_i32 = arith.constant 0 : i32
    return %arg0, %arg1 : i32, i32
  }
  func.func @transform_10(%arg0: i32, %arg1: i32, %arg2: i32) -> (i32, i32) {
    %c0_i32 = arith.constant 0 : i32
    return %arg0, %arg1 : i32, i32
  }
  func.func @transform_11(%arg0: i32, %arg1: i32, %arg2: i32) -> (i32, i32) {
    %c0_i32 = arith.constant 0 : i32
    return %arg0, %arg1 : i32, i32
  }
}

</mosaic_0001>

<bundles_post_ra>
// kernel: tpu_custom_call.1
= control target key start
LH: loop header
LB: loop body
LE: loop exit
PB: predicated region body
PF: predicated region fallthrough
CT: control target
= control target key end

     0   :  { %17 = vsyncpa [#allocation6], 0  ;;  %s1078_s0 = inlined_call_operand.hbm [shape: f32[16,32], index: 0, kind: input, shape index: {}]   ;;  %s1079_s1 = inlined_call_operand.hbm [shape: f32[16,32], index: 1, kind: input, shape index: {}]   ;;  %s1080_s2 = inlined_call_operand.hbm [shape: f32[16,32], index: 2, kind: input, shape index: {}]   ;;  %s1081_s3 = inlined_call_operand.hbm [shape: f32[32,64], index: 3, kind: input, shape index: {}]   ;;  %s1082_s4 = inlined_call_operand.hbm [shape: f32[32,64], index: 4, kind: input, shape index: {}]   ;;  %s1083_s5 = inlined_call_operand.hbm [shape: f32[32,64], index: 5, kind: input, shape index: {}]   ;;  %s1084_s6 = inlined_call_operand.vmem [shape: f32[1,64], index: 6, kind: input, shape index: {}]   ;;  %s1085_s7 = inlined_call_operand.vmem [shape: f32[1,64], index: 7, kind: input, shape index: {}]   ;;  %s1086_s8 = inlined_call_operand.vmem [shape: f32[1,64], index: 8, kind: input, shape index: {}]   ;;  %s1087_s9 = inlined_call_operand.hbm [shape: f32[16,64], index: 9, kind: output, shape index: {0}]   ;;  %s1088_s10 = inlined_call_operand.hbm [shape: f32[16,64], index: 10, kind: output, shape index: {1}]   ;;  %s1089_s11 = inlined_call_operand.hbm [shape: f32[16,64], index: 11, kind: output, shape index: {2}]  }
   0x1   :  { %18 = vsyncpa [#allocation9], 0 }
   0x2   :  { %19 = vsyncpa [#allocation12], 0 }
   0x3   :  { %20 = vsyncpa [#allocation15], 0 }
   0x4   :  { %21 = vsyncpa [#allocation7], 0 }
   0x5   :  { %22 = vsyncpa [#allocation18], 0  ;;  %s810_s17 = smov [#allocation8]   ;;  %s811_s19 = smov [#allocation11]  }
   0x6   :  { %s40_s18 = sshll.u32 %s810_s17, 4  ;;  %s64_s20 = sshll.u32 %s811_s19, 4  ;;  %s41_s18 = int_to_ptr.vmem [resolvable:$true] %s40_s18  ;;  %s882_s20 = int_to_ptr.vmem [resolvable:$true] %s64_s20 }
   0x7   :  { %s600_s23 = scalar_lea.hbm %s1079_s1, 256 }
   0x8   :  { %p601_p0 = scmp.ne.s32.totalorder %s1079_s1, %s600_s23  ;;  %p604_p1 = scmp.lt.u32.totalorder %s600_s23, %s1079_s1 }
   0xa   :  { %p606_p2 = pnand %p604_p1, %p601_p0 }
   0xc   :  { %609 = shalt.err (!%p606_p2)
}
   0xd   :  { %s610_s28 = scalar_lea.vmem %s41_s18, 256  ;;  %p615_p4 = scmp.lt.s32.totalorder %s41_s18, %s41_s18 }
   0xe   :  { %p611_p3 = scmp.ne.s32.totalorder %s41_s18, %s610_s28  ;;  %p616_p5 = scmp.lt.s32.totalorder %s610_s28, %s610_s28 }
  0x10   :  { %p617_p6 = por %p616_p5, %p615_p4 }
  0x12   :  { %p618_p7 = pnand %p617_p6, %p611_p3 }
  0x14   :  { %621 = shalt.err (!%p618_p7)
}
  0x15   :  { %s812_s29 = smov 128   ;;  %s813_s30 = smov 8  }
  0x16   :  { %46 = dma.hbm_to_vmem [thread:$0]  %s1079_s1, 256, %s41_s18, [#allocation9], %s812_s29, %s812_s29, %s813_s30  }
  0x17   :  { %s622_s16 = scalar_lea.hbm %s1081_s3, 512 }
  0x18   :  { %p623_p8 = scmp.ne.s32.totalorder %s1081_s3, %s622_s16  ;;  %p626_p9 = scmp.lt.u32.totalorder %s622_s16, %s1081_s3 }
  0x1a   :  { %p628_p10 = pnand %p626_p9, %p623_p8 }
  0x1c   :  { %631 = shalt.err (!%p628_p10)
}
  0x1d   :  { %s632_s23 = scalar_lea.vmem %s882_s20, 512  ;;  %p637_p12 = scmp.lt.s32.totalorder %s882_s20, %s882_s20 }
  0x1e   :  { %p633_p11 = scmp.ne.s32.totalorder %s882_s20, %s632_s23  ;;  %p638_p13 = scmp.lt.s32.totalorder %s632_s23, %s632_s23 }
  0x20   :  { %p639_p0 = por %p638_p13, %p637_p12 }
  0x22   :  { %p640_p1 = pnand %p639_p0, %p633_p11 }
  0x24   :  { %643 = shalt.err (!%p640_p1)
}
  0x25   :  { %70 = dma.hbm_to_vmem [thread:$0]  %s1081_s3, 512, %s882_s20, [#allocation12], %s812_s29, %s812_s29, %s813_s30  }
  0x26   :  { %s814_s24 = smov [#allocation5]   ;;  %s815_s26 = smov [#allocation10]  }
  0x27   :  { %s28_s25 = sshll.u32 %s814_s24, 4  ;;  %s52_s27 = sshll.u32 %s815_s26, 4  ;;  %s29_s25 = int_to_ptr.vmem [resolvable:$true] %s28_s25  ;;  %s919_s27 = int_to_ptr.vmem [resolvable:$true] %s52_s27 }
  0x28   :  { %s644_s13 = scalar_lea.hbm %s1078_s0, 256 }
  0x29   :  { %p645_p2 = scmp.ne.s32.totalorder %s1078_s0, %s644_s13  ;;  %p648_p3 = scmp.lt.u32.totalorder %s644_s13, %s1078_s0 }
  0x2b   :  { %p650_p4 = pnand %p648_p3, %p645_p2 }
  0x2d   :  { %653 = shalt.err (!%p650_p4)
}
  0x2e   :  { %s654_s3 = scalar_lea.vmem %s29_s25, 256  ;;  %p659_p6 = scmp.lt.s32.totalorder %s29_s25, %s29_s25 }
  0x2f   :  { %p655_p5 = scmp.ne.s32.totalorder %s29_s25, %s654_s3  ;;  %p660_p7 = scmp.lt.s32.totalorder %s654_s3, %s654_s3 }
  0x31   :  { %p661_p8 = por %p660_p7, %p659_p6 }
  0x33   :  { %p662_p9 = pnand %p661_p8, %p655_p5 }
  0x35   :  { %665 = shalt.err (!%p662_p9)
}
  0x36   :  { %34 = dma.hbm_to_vmem [thread:$0]  %s1078_s0, 256, %s29_s25, [#allocation6], %s812_s29, %s812_s29, %s813_s30  }
  0x37   :  { %s666_s23 = scalar_lea.hbm %s1080_s2, 256 }
  0x38   :  { %p667_p10 = scmp.ne.s32.totalorder %s1080_s2, %s666_s23  ;;  %p670_p11 = scmp.lt.u32.totalorder %s666_s23, %s1080_s2 }
  0x3a   :  { %p672_p12 = pnand %p670_p11, %p667_p10 }
  0x3c   :  { %675 = shalt.err (!%p672_p12)
}
  0x3d   :  { %s676_s28 = scalar_lea.vmem %s919_s27, 256  ;;  %p681_p0 = scmp.lt.s32.totalorder %s919_s27, %s919_s27 }
  0x3e   :  { %p677_p13 = scmp.ne.s32.totalorder %s919_s27, %s676_s28  ;;  %p682_p1 = scmp.lt.s32.totalorder %s676_s28, %s676_s28 }
  0x40   :  { %p683_p2 = por %p682_p1, %p681_p0 }
  0x42   :  { %p684_p3 = pnand %p683_p2, %p677_p13 }
  0x44   :  { %687 = shalt.err (!%p684_p3)
}
  0x45   :  { %58 = dma.hbm_to_vmem [thread:$0]  %s1080_s2, 256, %s919_s27, [#allocation9], %s812_s29, %s812_s29, %s813_s30  }
  0x46   :  { %s816_s12 = smov [#allocation13]   ;;  %s817_s14 = smov [#allocation14]  }
  0x47   :  { %s76_s13 = sshll.u32 %s816_s12, 4  ;;  %s88_s15 = sshll.u32 %s817_s14, 4  ;;  %s77_s13 = int_to_ptr.vmem [resolvable:$true] %s76_s13  ;;  %s956_s15 = int_to_ptr.vmem [resolvable:$true] %s88_s15 }
  0x48   :  { %s688_s3 = scalar_lea.hbm %s1082_s4, 512 }
  0x49   :  { %p689_p4 = scmp.ne.s32.totalorder %s1082_s4, %s688_s3  ;;  %p692_p5 = scmp.lt.u32.totalorder %s688_s3, %s1082_s4 }
  0x4b   :  { %p694_p6 = pnand %p692_p5, %p689_p4 }
  0x4d   :  { %697 = shalt.err (!%p694_p6)
}
  0x4e   :  { %s698_s2 = scalar_lea.vmem %s77_s13, 512  ;;  %p703_p8 = scmp.lt.s32.totalorder %s77_s13, %s77_s13 }
  0x4f   :  { %p699_p7 = scmp.ne.s32.totalorder %s77_s13, %s698_s2  ;;  %p704_p9 = scmp.lt.s32.totalorder %s698_s2, %s698_s2 }
  0x51   :  { %p705_p10 = por %p704_p9, %p703_p8 }
  0x53   :  { %p706_p11 = pnand %p705_p10, %p699_p7 }
  0x55   :  { %709 = shalt.err (!%p706_p11)
}
  0x56   :  { %82 = dma.hbm_to_vmem [thread:$0]  %s1082_s4, 512, %s77_s13, [#allocation12], %s812_s29, %s812_s29, %s813_s30  }
  0x57   :  { %s710_s24 = scalar_lea.hbm %s1083_s5, 512 }
  0x58   :  { %p711_p12 = scmp.ne.s32.totalorder %s1083_s5, %s710_s24  ;;  %p714_p13 = scmp.lt.u32.totalorder %s710_s24, %s1083_s5 }
  0x5a   :  { %p716_p0 = pnand %p714_p13, %p711_p12 }
  0x5c   :  { %719 = shalt.err (!%p716_p0)
}
  0x5d   :  { %s720_s12 = scalar_lea.vmem %s956_s15, 512  ;;  %p725_p2 = scmp.lt.s32.totalorder %s956_s15, %s956_s15 }
  0x5e   :  { %p721_p1 = scmp.ne.s32.totalorder %s956_s15, %s720_s12  ;;  %p726_p3 = scmp.lt.s32.totalorder %s720_s12, %s720_s12 }
  0x60   :  { %p727_p4 = por %p726_p3, %p725_p2 }
  0x62   :  { %p728_p5 = pnand %p727_p4, %p721_p1 }
  0x64   :  { %731 = shalt.err (!%p728_p5)
}
  0x65   :  { %94 = dma.hbm_to_vmem [thread:$0]  %s1083_s5, 512, %s956_s15, [#allocation15], %s812_s29, %s812_s29, %s813_s30  }
  0x66   :  { %798 = dma.done.wait [#allocation6], 256  }
  0x67   :  { %799 = vsyncadd [#allocation6], 4294967040 }
  0x68   :  { %800 = dma.done.wait [#allocation9], 512  }
  0x69   :  { %801 = vsyncadd [#allocation9], 4294966784 }
  0x6a   :  { %802 = dma.done.wait [#allocation12], 1024  }
  0x6b   :  { %803 = vsyncadd [#allocation12], 4294966272 }
  0x6c   :  { %804 = dma.done.wait [#allocation15], 512  }
  0x6d   :  { %805 = vsyncadd [#allocation15], 4294966784  ;;  %vm123_vm0 = vcmask 523264   ;;  %v818_v0 = vmov 0.0   ;;  %v134_v1 = vld [vmem:[#allocation11] sm:$0xff]  ;;  %v135_v2 = vld [vmem:[#allocation11 + $0x8] sm:$0xff] }
  0x6e   :  { %125 = vst.msk [vmem:[#allocation2 + $0x8] sm:$0xff] %vm123_vm0, %v818_v0  ;;  %124 = vst.msk [vmem:[#allocation2] sm:$0xff] %vm123_vm0, %v818_v0  ;;  %v136_v3 = vld [vmem:[#allocation11 + $0x10] sm:$0xff]  ;;  %vm138_vm1 = vcmask 261120   ;;  %v564_v4 = vpack.c.bf16 %v135_v2, %v134_v1  ;;  %v137_v5 = vld [vmem:[#allocation11 + $0x18] sm:$0xff]  ;;  %s819_s17 = smov [#allocation16]  }
  0x6f   :  { %126 = vst.msk [vmem:[#allocation3] sm:$0xff] %vm123_vm0, %v818_v0  ;;  %127 = vst.msk [vmem:[#allocation3 + $0x8] sm:$0xff] %vm123_vm0, %v818_v0  ;;  %v229_v6 = vld [vmem:[#allocation13] sm:$0xff]  ;;  %v230_v7 = vld [vmem:[#allocation13 + $0x8] sm:$0xff]  ;;  %v568_v8 = vpack.c.bf16 %v137_v5, %v136_v3  ;;  %s458_s3 = sshll.u32 %s819_s17, 4  ;;  %s820_s20 = smov [#allocation17]   ;;  %s459_s3 = int_to_ptr.vmem [resolvable:$true] %s458_s3 }
  0x70   :  { %128 = vst.msk [vmem:[#allocation4] sm:$0xff] %vm123_vm0, %v818_v0  ;;  %129 = vst.msk [vmem:[#allocation4 + $0x8] sm:$0xff] %vm123_vm0, %v818_v0  ;;  %v572_v9 = vpack.c.bf16 %v230_v7, %v229_v6  ;;  %v132_v10 = vld [vmem:[#allocation5] sm:$0xff]  ;;  %v322_v11 = vld [vmem:[#allocation14] sm:$0xff]  ;;  %565 = vmatprep.subr.bf16.mxu0 %v564_v4  ;;  %s470_s19 = sshll.u32 %s820_s20, 4  ;;  %s732_s21 = scalar_lea.vmem %s459_s3, 256  ;;  %s1017_s19 = int_to_ptr.vmem [resolvable:$true] %s470_s19 }
  0x71   :  { %539 = vmatprep.mubr.msk.f32.mxu0 %vm138_vm1, %v132_v10  ;;  %v323_v12 = vld [vmem:[#allocation14 + $0x8] sm:$0xff]  ;;  %v231_v13 = vld [vmem:[#allocation13 + $0x10] sm:$0xff]  ;;  %v232_v14 = vld [vmem:[#allocation13 + $0x18] sm:$0xff]  ;;  %567 = vmatpush3.bf16.msra.mxu0 %v564_v4  ;;  %p733_p6 = scmp.ne.s32.totalorder %s459_s3, %s732_s21  ;;  %p737_p7 = scmp.lt.s32.totalorder %s459_s3, %s459_s3 }
  0x72   :  { %573 = vmatprep.subr.bf16.mxu1 %v572_v9  ;;  %v576_v15 = vpack.c.bf16 %v232_v14, %v231_v13  ;;  %v227_v16 = vld [vmem:[#allocation8] sm:$0xff]  ;;  %569 = vmatprep.subr.bf16.mxu0 %v568_v8  ;;  %v580_v17 = vpack.c.bf16 %v323_v12, %v322_v11  ;;  %v324_v18 = vld [vmem:[#allocation14 + $0x10] sm:$0xff]  ;;  %v325_v19 = vld [vmem:[#allocation14 + $0x18] sm:$0xff]  ;;  %p738_p8 = scmp.lt.s32.totalorder %s732_s21, %s732_s21 }
  0x73   :  { %575 = vmatpush3.bf16.msra.mxu1 %v572_v9  ;;  %550 = vmatprep.mubr.msk.f32.mxu1 %vm138_vm1, %v227_v16  ;;  %v133_v20 = vld [vmem:[#allocation5 + $0x8] sm:$0xff]  ;;  %v584_v21 = vpack.c.bf16 %v325_v19, %v324_v18  ;;  %v228_v22 = vld [vmem:[#allocation8 + $0x8] sm:$0xff]  ;;  %v320_v23 = vld [vmem:[#allocation10] sm:$0xff] }
  0x74   :  { %577 = vmatprep.subr.bf16.mxu1 %v576_v15  ;;  %v321_v24 = vld [vmem:[#allocation10 + $0x8] sm:$0xff]  ;;  %v510_v40 = vld [vmem:[%s1084_s6] ss:$0 sm:$0xff]  ;;  %p739_p9 = por %p738_p8, %p737_p7 }
  0x75   :  { %571 = vmatpush3.bf16.msra.mxu0 %v568_v8  ;;  %v131_v25 = vld [vmem:[#allocation2 + $0x8] sm:$0xff]  ;;  %v130_v26 = vld [vmem:[#allocation2] sm:$0xff] }
  0x76   :  { %581 = vmatprep.subr.bf16.mxu0 %v580_v17  ;;  %v226_v27 = vld [vmem:[#allocation3 + $0x8] sm:$0xff]  ;;  %v225_v29 = vld [vmem:[#allocation3] sm:$0xff]  ;;  %v511_v43 = vld [vmem:[%s1085_s7] ss:$0 sm:$0xff]  ;;  %p740_p10 = pnand %p739_p9, %p733_p6 }
  0x77   :  { %579 = vmatpush3.bf16.msra.mxu1 %v576_v15  ;;  %v319_v37 = vld [vmem:[#allocation4 + $0x8] sm:$0xff]  ;;  %v318_v38 = vld [vmem:[#allocation4] sm:$0xff] }
  0x78   :  { %540 = vmatmul.mubr.msk.f32.vlgmr.msra.gmra.mrb[0].mxu0 %vm138_vm1, %v133_v20  ;;  %v512_v53 = vld [vmem:[%s1086_s8] ss:$0 sm:$0xff] }
  0x79   :  { %583 = vmatpush3.bf16.msra.mxu0 %v580_v17  ;;  %561 = vmatprep.mubr.msk.f32.mxu0 %vm138_vm1, %v320_v23 }
  0x7a   :  { %551 = vmatmul.mubr.msk.f32.vlgmr.msra.gmra.mrb[0].mxu1 %vm138_vm1, %v228_v22  ;;  %585 = vmatprep.subr.bf16.mxu0 %v584_v21 }
  0x7d   :  { %587 = vmatpush3.bf16.msra.mxu0 %v584_v21 }
  0x80   :  { %562 = vmatmul.mubr.msk.f32.vlgmr.msra.gmra.mrb[2].mxu0 %vm138_vm1, %v321_v24 }
 0x14b   :  { %v541_v28 = vpop.f32.mrb[0].mxu0 }
 0x14c   :  { %v221_v30 = vadd.f32 %v541_v28, %v131_v25  ;;  %v211_v31 = vpop.f32.mrb[1].mxu0 }
 0x14d   :  { %v552_v32 = vpop.f32.mrb[0].mxu1  ;;  %v220_v33 = vadd.f32 %v211_v31, %v130_v26 }
 0x14e   :  { %v315_v34 = vadd.f32 %v552_v32, %v226_v27  ;;  %v305_v35 = vpop.f32.mrb[1].mxu1  ;;  %224 = vst.msk [vmem:[#allocation2 + $0x8] sm:$0xff] %vm123_vm0, %v221_v30 }
 0x14f   :  { %v314_v36 = vadd.f32 %v305_v35, %v225_v29  ;;  %223 = vst.msk [vmem:[#allocation2] sm:$0xff] %vm123_vm0, %v220_v33 }
 0x150   :  { %317 = vst.msk [vmem:[#allocation3 + $0x8] sm:$0xff] %vm123_vm0, %v315_v34 }
 0x151   :  { %316 = vst.msk [vmem:[#allocation3] sm:$0xff] %vm123_vm0, %v314_v36 }
 0x153   :  { %v563_v39 = vpop.f32.mrb[2].mxu0 }
 0x154   :  { %v408_v41 = vadd.f32 %v563_v39, %v319_v37  ;;  %v398_v42 = vpop.f32.mrb[3].mxu0 }
 0x155   :  { %v407_v44 = vadd.f32 %v398_v42, %v318_v38  ;;  %v415_v45 = vld [vmem:[#allocation2 + $0x8] sm:$0xff] }
 0x156   :  { %410 = vst.msk [vmem:[#allocation4 + $0x8] sm:$0xff] %vm123_vm0, %v408_v41  ;;  %v414_v47 = vld [vmem:[#allocation2] sm:$0xff]  ;;  %v424_v48 = vadd.f32 %v510_v40, %v415_v45 }
 0x157   :  { %v428_v46 = vld [vmem:[#allocation3 + $0x8] sm:$0xff]  ;;  %409 = vst.msk [vmem:[#allocation4] sm:$0xff] %vm123_vm0, %v407_v44  ;;  %v423_v51 = vadd.f32 %v510_v40, %v414_v47 }
 0x158   :  { %v427_v49 = vld [vmem:[#allocation3] sm:$0xff]  ;;  %v437_v50 = vadd.f32 %v511_v43, %v428_v46  ;;  %426 = vst.msk [vmem:[#allocation16 + $0x8] sm:$0xff] %vm123_vm0, %v424_v48 }
 0x159   :  { %v436_v52 = vadd.f32 %v511_v43, %v427_v49  ;;  %425 = vst.msk [vmem:[#allocation16] sm:$0xff] %vm123_vm0, %v423_v51 }
 0x15a   :  { %439 = vst.msk [vmem:[#allocation17 + $0x8] sm:$0xff] %vm123_vm0, %v437_v50 }
 0x15b   :  { %438 = vst.msk [vmem:[#allocation17] sm:$0xff] %vm123_vm0, %v436_v52 }
 0x15c   :  { %743 = shalt.err (!%p740_p10)
}
 0x15d   :  { %s744_s27 = scalar_lea.hbm %s1087_s9, 256 }
 0x15e   :  { %p745_p11 = scmp.ne.s32.totalorder %s1087_s9, %s744_s27  ;;  %p748_p12 = scmp.lt.u32.totalorder %s744_s27, %s1087_s9 }
 0x160   :  { %p750_p13 = pnand %p748_p12, %p745_p11 }
 0x162   :  { %753 = shalt.err (!%p750_p13)
}
 0x163   :  { %464 = dma.vmem_to_hbm [thread:$0]  %s459_s3, 256, %s1087_s9, [#allocation7], %s812_s29, %s812_s29, %s813_s30  }
 0x164   :  { %s754_s28 = scalar_lea.vmem %s1017_s19, 256  ;;  %p759_p1 = scmp.lt.s32.totalorder %s1017_s19, %s1017_s19 }
 0x165   :  { %p755_p0 = scmp.ne.s32.totalorder %s1017_s19, %s754_s28  ;;  %p760_p2 = scmp.lt.s32.totalorder %s754_s28, %s754_s28 }
 0x167   :  { %p761_p3 = por %p760_p2, %p759_p1 }
 0x169   :  { %p762_p4 = pnand %p761_p3, %p755_p0 }
 0x16b   :  { %765 = shalt.err (!%p762_p4)
}
 0x16c   :  { %s766_s12 = scalar_lea.hbm %s1088_s10, 256 }
 0x16d   :  { %p767_p5 = scmp.ne.s32.totalorder %s1088_s10, %s766_s12  ;;  %p770_p6 = scmp.lt.u32.totalorder %s766_s12, %s1088_s10 }
 0x16f   :  { %p772_p7 = pnand %p770_p6, %p767_p5 }
 0x171   :  { %775 = shalt.err (!%p772_p7)
}
 0x172   :  { %476 = dma.vmem_to_hbm [thread:$0]  %s1017_s19, 256, %s1088_s10, [#allocation18], %s812_s29, %s812_s29, %s813_s30   ;;  %v441_v54 = vld [vmem:[#allocation4 + $0x8] sm:$0xff]  ;;  %v440_v55 = vld [vmem:[#allocation4] sm:$0xff] }
 0x173   :  { %s821_s16 = smov [#allocation19]   ;;  %v450_v56 = vadd.f32 %v512_v53, %v441_v54  ;;  %v449_v57 = vadd.f32 %v512_v53, %v440_v55 }
 0x174   :  { %s482_s17 = sshll.u32 %s821_s16, 4  ;;  %s483_s17 = int_to_ptr.vmem [resolvable:$true] %s482_s17 }
 0x175   :  { %452 = vst.msk [vmem:[#allocation19 + $0x8] sm:$0xff] %vm123_vm0, %v450_v56  ;;  %451 = vst.msk [vmem:[#allocation19] sm:$0xff] %vm123_vm0, %v449_v57  ;;  %s776_s3 = scalar_lea.vmem %s483_s17, 256  ;;  %p781_p9 = scmp.lt.s32.totalorder %s483_s17, %s483_s17 }
 0x176   :  { %p777_p8 = scmp.ne.s32.totalorder %s483_s17, %s776_s3  ;;  %p782_p10 = scmp.lt.s32.totalorder %s776_s3, %s776_s3 }
 0x178   :  { %p783_p11 = por %p782_p10, %p781_p9 }
 0x17a   :  { %p784_p12 = pnand %p783_p11, %p777_p8 }
 0x17c   :  { %787 = shalt.err (!%p784_p12)
}
 0x17d   :  { %s788_s19 = scalar_lea.hbm %s1089_s11, 256 }
 0x17e   :  { %p789_p13 = scmp.ne.s32.totalorder %s1089_s11, %s788_s19  ;;  %p792_p0 = scmp.lt.u32.totalorder %s788_s19, %s1089_s11 }
 0x180   :  { %p794_p1 = pnand %p792_p0, %p789_p13 }
 0x182   :  { %797 = shalt.err (!%p794_p1)
}
 0x183   :  { %488 = dma.vmem_to_hbm [thread:$0]  %s483_s17, 256, %s1089_s11, [#allocation18], %s812_s29, %s812_s29, %s813_s30  }
 0x184   :  { %806 = dma.done.wait [#allocation7], 256  }
 0x185   :  { %807 = vsyncadd [#allocation7], 4294967040 }
 0x186   :  { %808 = dma.done.wait [#allocation18], 512  }
 0x187   :  { %809 = vsyncadd [#allocation18], 4294966784 }
 0x188   :  { %498 = vsyncpa [#allocation6], 1 }
 0x189   :  { %499 = vsyncpa [#allocation9], 1 }
 0x18a   :  { %500 = vsyncpa [#allocation12], 1 }
 0x18b   :  { %501 = vsyncpa [#allocation15], 1 }
 0x18c   :  { %502 = vsyncpa [#allocation7], 1 }
 0x18d   :  { %503 = vsyncpa [#allocation18], 1 }

</bundles_post_ra>
